<compile_context>
chip_gen: v5e
topology: v5e:2x2
jax: 0.10.0
libtpu: 0.0.40
codegen_flags: <defaults>
</compile_context>

<pallas_src>
import functools

import jax
import jax.numpy as jnp
from jax import lax
from jax.experimental import pallas as pl
from jax.experimental.pallas import tpu as pltpu


def _round_up(n, m):
    return ((n + m - 1) // m) * m


# ------------------------------ Pallas kernel ------------------------------ #

def moe_expert_kernel(x_ref, w_fc_ref, b_fc_ref, w_pj_ref, b_pj_ref,
                      g_ref, o_ref):
    """grid = (token_tiles [parallel], E [arbitrary], hidden_tiles [arbitrary]).

    The output block index depends only on the token-tile axis, so o_ref stays
    VMEM-resident across the (expert, hidden-tile) reduction axes and serves
    directly as the f32 accumulator (no extra scratch).
    """
    e = pl.program_id(1)
    h = pl.program_id(2)

    @pl.when((e == 0) & (h == 0))
    def _init():
        o_ref[...] = jnp.zeros_like(o_ref)

    x = x_ref[...]                                   # (TM, C)  bf16
    wa = w_fc_ref[0, 0]                              # (C, TH)  bf16  ('a' half)
    wb = w_fc_ref[0, 1]                              # (C, TH)  bf16  ('b' half)

    # Canonical (M,K)x(K,N) matmuls, f32 accumulation.
    a = jnp.dot(x, wa, preferred_element_type=jnp.float32) + b_fc_ref[0, 0]
    b = jnp.dot(x, wb, preferred_element_type=jnp.float32) + b_fc_ref[0, 1]
    # a * silu(b) in f32 (v5e has no bf16 VPU/EUP); cast the product to bf16
    # for the proj matmul to halve the (TM, TH) intermediate footprint.
    hidden = (a * (b * jax.nn.sigmoid(b))).astype(jnp.bfloat16)   # (TM, TH)

    y = jnp.dot(hidden, w_pj_ref[0], preferred_element_type=jnp.float32)
    # Proj bias contributes exactly once per expert: fold it in on h == 0.
    y = y + b_pj_ref[0] * (h == 0).astype(jnp.float32)            # (TM, C)

    o_ref[...] += y * g_ref[0]                       # gating column (TM, 1)


# ------------------------- tile / VMEM budget logic ------------------------- #

def _tpu_vmem_capacity():
    try:
        info = pltpu.get_tpu_info()
        cap = getattr(info, "vmem_capacity_bytes", None)
        if cap:
            return int(cap)
    except Exception:
        pass
    return 64 * 1024 * 1024                      # conservative (v7x-sized)


def _device_kind():
    try:
        return jax.devices()[0].device_kind.lower()
    except Exception:
        return ""


def _pick_tiles(N, C, H, vmem_cap, kind):
    """Pick (TM, TH, Hp).  Arithmetic intensity of the expert FFN on the
    expert-weight stream is ~TM flops/byte, so TM targets each generation's
    compute/HBM balance point; TH is sized so double-buffered weight blocks +
    intermediates fit the actual VMEM capacity."""
    if "v5" in kind:
        tm_target = 256          # v5e balance point ~240; bigger TM buys nothing
    elif "v7" in kind:
        tm_target = 512          # 64 MiB VMEM; both TCs re-stream weights
    else:                        # v6e / unknown: balance point ~650
        tm_target = 640
    TM = _round_up(min(tm_target, max(N, 8)), 8)

    budget = int(vmem_cap * 0.55)

    def vmem_use(th):
        w_fc = 2 * (2 * C * th) * 2        # (2, C, TH) bf16, double-buffered
        w_pj = 2 * (th * C) * 2            # (TH, C)    bf16, double-buffered
        x_buf = 2 * TM * C * 2             # bf16 x tile, double-buffered
        o_buf = TM * C * 4                 # resident f32 accumulator
        inter = 3 * TM * th * 4            # a / b / hidden intermediates
        return w_fc + w_pj + x_buf + o_buf + inter

    if vmem_use(H) <= budget:
        TH = H
    else:
        TH = 128
        for cand in (2048, 1024, 512, 256, 128):
            if cand <= H and vmem_use(cand) <= budget:
                TH = cand
                break
    Hp = _round_up(H, TH)
    return TM, TH, Hp


# ------------------------------ JAX wrapper -------------------------------- #

@functools.partial(jax.jit, static_argnames=("n_shared", "k", "route_scale"))
def moe_mlp_forward(x, params, *, n_shared, k, route_scale):
    """Matches MoEMLPParallel.forward (dropout p=0): returns (out, bal_loss)."""
    B, T, C = x.shape
    N = B * T
    xflat = x.reshape(N, C).astype(jnp.float32)

    gate_w = params["gate_w"]          # (E, C)        f32
    gate_b = params["gate_b"]          # (E,)          f32
    fc_w = params["fc_w"]              # (E, 2, C, H)  bf16  [:,0]=Wa^T [:,1]=Wb^T
    fc_b = params["fc_b"]              # (E, 2, H)     f32
    pj_w = params["proj_w"]            # (E, H, C)     bf16  (canonical K x N)
    pj_b = params["proj_b"]            # (E, C)        f32
    E = gate_w.shape[0]
    H = pj_w.shape[1]

    # ---- gating + routing (plain XLA: tiny O(N*E) glue, E << 128 lanes) ----
    logits = xflat @ gate_w.T + gate_b
    probs = jax.nn.softmax(logits, axis=-1)                       # (N, E) f32
    score_sum = probs.sum(axis=0)                                 # (E,)

    shared_part = probs[:, :n_shared]
    rest_part = probs[:, n_shared:]
    topk_vals, topk_idx = lax.top_k(rest_part, k)
    mask = jnp.zeros_like(rest_part).at[
        jnp.arange(N)[:, None], topk_idx].set(topk_vals)
    # route_scale applied BEFORE renormalization, exactly as in the reference.
    combined = jnp.concatenate([shared_part, mask], axis=-1) * route_scale
    gating = combined / (combined.sum(axis=-1, keepdims=True) + 1e-8)  # (N, E)
    usage_count = (combined > 0).astype(jnp.float32).sum(axis=0)       # (E,)

    # ---- tiling -------------------------------------------------------------
    vmem_cap = _tpu_vmem_capacity()
    TM, TH, Hp = _pick_tiles(N, C, H, vmem_cap, _device_kind())
    N_pad = _round_up(N, TM)
    n_tiles = N_pad // TM
    n_h = Hp // TH

    # Padded rows get gating weight 0 -> contribute exactly 0 to the output.
    x_bf = jnp.pad(xflat, ((0, N_pad - N), (0, 0))).astype(jnp.bfloat16)
    gating_t = jnp.pad(gating, ((0, N_pad - N), (0, 0))).T.reshape(E, N_pad, 1)

    if Hp != H:
        # Zero-padded hidden columns produce hidden == 0 -> contribute 0.
        # TODO(synk): pre-pad weights once at parameter-load time, not per call.
        fc_w = jnp.pad(fc_w, ((0, 0), (0, 0), (0, 0), (0, Hp - H)))
        fc_b = jnp.pad(fc_b, ((0, 0), (0, 0), (0, Hp - H)))
        pj_w = jnp.pad(pj_w, ((0, 0), (0, Hp - H), (0, 0)))
    fc_b4 = fc_b.reshape(E, 2, 1, Hp)
    pj_b3 = pj_b.reshape(E, 1, C)

    # ---- fused parallel expert FFN (Pallas kernel) --------------------------
    out_pad = pl.pallas_call(
        moe_expert_kernel,
        out_shape=jax.ShapeDtypeStruct((N_pad, C), jnp.float32),
        grid_spec=pltpu.PrefetchScalarGridSpec(
            num_scalar_prefetch=0,
            grid=(n_tiles, E, n_h),
            in_specs=[
                pl.BlockSpec((TM, C), lambda i, e, h: (i, 0)),             # x tile
                pl.BlockSpec((1, 2, C, TH), lambda i, e, h: (e, 0, 0, h)), # Wa^T|Wb^T
                pl.BlockSpec((1, 2, 1, TH), lambda i, e, h: (e, 0, 0, h)), # fc bias
                pl.BlockSpec((1, TH, C), lambda i, e, h: (e, h, 0)),       # proj W
                pl.BlockSpec((1, 1, C), lambda i, e, h: (e, 0, 0)),        # proj bias
                pl.BlockSpec((1, TM, 1), lambda i, e, h: (e, i, 0)),       # gating col
            ],
            out_specs=pl.BlockSpec((TM, C), lambda i, e, h: (i, 0)),
        ),
        compiler_params=pltpu.CompilerParams(
            dimension_semantics=("parallel", "arbitrary", "arbitrary"),
            vmem_limit_bytes=int(vmem_cap * 0.70)),
    )(x_bf, fc_w, fc_b4, pj_w, pj_b3, gating_t)

    out = out_pad[:N].reshape(B, T, C).astype(x.dtype)

    # ---- balance loss --------------------------------------------------------
    Kp = float(n_shared + k)
    Np = float(E)
    usage_factor = Np / (Kp * N) * usage_count
    score_prob = score_sum / N
    bal_loss = jnp.sum(usage_factor * score_prob)
    return out, bal_loss


# -------------------------- deterministic parameters ------------------------ #

def init_params(key, n_embd, n_total_experts, hidden_dim):
    """Parameters matching MoEMLPParallel's init, stored in kernel-friendly
    layouts: fc weight pre-transposed to (E, 2, C, H) so both expert matmuls
    are canonical (M,K)x(K,N) (no per-step transpose on the MXU path); expert
    weights in bf16 (streamed at MXU full rate), biases / gate in f32."""
    k1, k2, k3, k4 = jax.random.split(key, 4)
    E, C, H = n_total_experts, n_embd, hidden_dim
    bound = 1.0 / (C ** 0.5)
    gate_w = jax.random.uniform(k1, (E, C), jnp.float32, -bound, bound)
    gate_b = jax.random.uniform(k2, (E,), jnp.float32, -bound, bound)
    # fc_weight ~ N(0, 0.02) with the PyTorch layout (E, 2H, C):
    # rows :H are the 'a' half, rows H: are the silu'd 'b' half (a * silu(b)).
    fc_full = 0.02 * jax.random.normal(k3, (E, 2 * H, C), jnp.float32)
    wa = fc_full[:, :H, :]                              # (E, H, C)
    wb = fc_full[:, H:, :]                              # (E, H, C)
    fc_w = jnp.swapaxes(jnp.stack([wa, wb], axis=1), 2, 3)      # (E, 2, C, H)
    pj_w = 0.02 * jax.random.normal(k4, (E, H, C), jnp.float32)  # (E, H, C)
    return {
        "gate_w": gate_w,
        "gate_b": gate_b,
        "fc_w": fc_w.astype(jnp.bfloat16),
        "fc_b": jnp.zeros((E, 2, H), jnp.float32),
        "proj_w": pj_w.astype(jnp.bfloat16),
        "proj_b": jnp.zeros((E, C), jnp.float32),
    }


if __name__ == "__main__":
    # Small config consistent with MoeGPTConfig (moe_impl='parallel'):
    #   n_experts=4, m_sub_experts=1 -> E=4; n_shared_experts=1 -> n_shared=1;
    #   n_activated_experts=2 -> k=2; ffn_factor=2 -> hidden_dim = 2*n_embd.
    B, T, C = 2, 8, 32
    E, n_shared, k = 4, 1, 2
    route_scale = 1.0
    hidden_dim = 2 * C

    key = jax.random.PRNGKey(0)
    kx, kp = jax.random.split(key)
    x = jax.random.normal(kx, (B, T, C), jnp.float32)
    params = init_params(kp, C, E, hidden_dim)

    out, bal_loss = moe_mlp_forward(
        x, params, n_shared=n_shared, k=k, route_scale=route_scale)
    out = jax.block_until_ready(out)
    bal_loss = jax.block_until_ready(bal_loss)

    assert out.shape == (B, T, C)
    assert bal_loss.shape == ()
    assert bool(jnp.isfinite(out).all()) and bool(jnp.isfinite(bal_loss))
    print("KERNEL_OK")
</pallas_src>

<mosaic_0001>
module attributes {stable_mosaic.version = 11 : i64} {
  func.func @moe_expert_kernel(%arg0: i32, %arg1: i32, %arg2: i32, %arg3: memref<16x32xbf16, #tpu.memory_space<vmem>>, %arg4: memref<1x2x32x64xbf16, #tpu.memory_space<vmem>>, %arg5: memref<1x2x1x64xf32, #tpu.memory_space<vmem>>, %arg6: memref<1x64x32xbf16, #tpu.memory_space<vmem>>, %arg7: memref<1x1x32xf32, #tpu.memory_space<vmem>>, %arg8: memref<1x16x1xf32, #tpu.memory_space<vmem>>, %arg9: memref<16x32xf32, #tpu.memory_space<vmem>>) attributes {dimension_semantics = [#tpu.dimension_semantics<parallel>, #tpu.dimension_semantics<arbitrary>, #tpu.dimension_semantics<arbitrary>], iteration_bounds = array<i64: 1, 4, 1>, scalar_prefetch = 0 : i64, scratch_operands = 0 : i64, tpu.core_type = #tpu.core_type<tc>, window_params = [{transform_indices = @transform_0, window_bounds = array<i64: 16, 32>}, {transform_indices = @transform_1, window_bounds = array<i64: 1, 2, 32, 64>}, {transform_indices = @transform_2, window_bounds = array<i64: 1, 2, 1, 64>}, {transform_indices = @transform_3, window_bounds = array<i64: 1, 64, 32>}, {transform_indices = @transform_4, window_bounds = array<i64: 1, 1, 32>}, {transform_indices = @transform_5, window_bounds = array<i64: 1, 16, 1>}, {transform_indices = @transform_6, window_bounds = array<i64: 16, 32>}]} {
    %c0_i32 = arith.constant 0 : i32
    %0 = arith.cmpi eq, %arg1, %c0_i32 : i32
    %c0_i32_0 = arith.constant 0 : i32
    %1 = arith.cmpi eq, %arg2, %c0_i32_0 : i32
    %2 = arith.andi %0, %1 : i1
    %3 = arith.extui %2 : i1 to i32
    %c0_i32_1 = arith.constant 0 : i32
    %4 = arith.cmpi ne, %3, %c0_i32_1 : i32
    scf.if %4 {
      %cst_35 = arith.constant 0.000000e+00 : f32
      %47 = vector.broadcast %cst_35 : f32 to vector<16x32xf32>
      %c0_36 = arith.constant 0 : index
      %c0_37 = arith.constant 0 : index
      %48 = vector.load %arg9[%c0_36, %c0_37] : memref<16x32xf32, #tpu.memory_space<vmem>>, vector<16x32xf32>
      tpu.vector_store %arg9[%c0_36, %c0_37], %47 {strides = array<i32>} : memref<16x32xf32, #tpu.memory_space<vmem>>, vector<16x32xf32>,
    } else {
    }
    %c0 = arith.constant 0 : index
    %c0_2 = arith.constant 0 : index
    %5 = vector.load %arg3[%c0, %c0_2] : memref<16x32xbf16, #tpu.memory_space<vmem>>, vector<16x32xbf16>
    %c0_3 = arith.constant 0 : index
    %c0_4 = arith.constant 0 : index
    %c0_5 = arith.constant 0 : index
    %c0_6 = arith.constant 0 : index
    %6 = vector.load %arg4[%c0_3, %c0_4, %c0_5, %c0_6] : memref<1x2x32x64xbf16, #tpu.memory_space<vmem>>, vector<1x1x32x64xbf16>
    %7 = vector.shape_cast %6 : vector<1x1x32x64xbf16> to vector<32x64xbf16>
    %c0_7 = arith.constant 0 : index
    %c1 = arith.constant 1 : index
    %c0_8 = arith.constant 0 : index
    %c0_9 = arith.constant 0 : index
    %8 = vector.load %arg4[%c0_7, %c1, %c0_8, %c0_9] : memref<1x2x32x64xbf16, #tpu.memory_space<vmem>>, vector<1x1x32x64xbf16>
    %9 = vector.shape_cast %8 : vector<1x1x32x64xbf16> to vector<32x64xbf16>
    %cst = arith.constant dense<0.000000e+00> : vector<16x64xf32>
    %10 = tpu.matmul %5, %7, %cst {dimension_numbers = #tpu.dot_dimension_numbers<[1], [0], [0], [1], [0, 0, 1, 1], [], []>} : vector<16x32xbf16>, vector<32x64xbf16>, vector<16x64xf32> -> vector<16x64xf32>
    %c0_10 = arith.constant 0 : index
    %c0_11 = arith.constant 0 : index
    %c0_12 = arith.constant 0 : index
    %c0_13 = arith.constant 0 : index
    %11 = vector.load %arg5[%c0_10, %c0_11, %c0_12, %c0_13] : memref<1x2x1x64xf32, #tpu.memory_space<vmem>>, vector<1x1x1x64xf32>
    %12 = vector.shape_cast %11 : vector<1x1x1x64xf32> to vector<1x64xf32>
    %13 = vector.broadcast %12 : vector<1x64xf32> to vector<16x64xf32>
    %14 = arith.addf %10, %13 : vector<16x64xf32>
    %cst_14 = arith.constant dense<0.000000e+00> : vector<16x64xf32>
    %15 = tpu.matmul %5, %9, %cst_14 {dimension_numbers = #tpu.dot_dimension_numbers<[1], [0], [0], [1], [0, 0, 1, 1], [], []>} : vector<16x32xbf16>, vector<32x64xbf16>, vector<16x64xf32> -> vector<16x64xf32>
    %c0_15 = arith.constant 0 : index
    %c1_16 = arith.constant 1 : index
    %c0_17 = arith.constant 0 : index
    %c0_18 = arith.constant 0 : index
    %16 = vector.load %arg5[%c0_15, %c1_16, %c0_17, %c0_18] : memref<1x2x1x64xf32, #tpu.memory_space<vmem>>, vector<1x1x1x64xf32>
    %17 = vector.shape_cast %16 : vector<1x1x1x64xf32> to vector<1x64xf32>
    %18 = vector.broadcast %17 : vector<1x64xf32> to vector<16x64xf32>
    %19 = arith.addf %15, %18 : vector<16x64xf32>
    %20 = arith.negf %19 : vector<16x64xf32>
    %21 = math.exp %20 : vector<16x64xf32>
    %cst_19 = arith.constant 1.000000e+00 : f32
    %22 = vector.broadcast %cst_19 : f32 to vector<16x64xf32>
    %23 = arith.addf %22, %21 : vector<16x64xf32>
    %24 = arith.divf %22, %23 : vector<16x64xf32>
    %25 = arith.mulf %19, %24 : vector<16x64xf32>
    %26 = arith.mulf %14, %25 : vector<16x64xf32>
    %27 = arith.truncf %26 : vector<16x64xf32> to vector<16x64xbf16>
    %c0_20 = arith.constant 0 : index
    %c0_21 = arith.constant 0 : index
    %c0_22 = arith.constant 0 : index
    %28 = vector.load %arg6[%c0_20, %c0_21, %c0_22] : memref<1x64x32xbf16, #tpu.memory_space<vmem>>, vector<1x64x32xbf16>
    %29 = vector.shape_cast %28 : vector<1x64x32xbf16> to vector<64x32xbf16>
    %cst_23 = arith.constant dense<0.000000e+00> : vector<16x32xf32>
    %30 = tpu.matmul %27, %29, %cst_23 {dimension_numbers = #tpu.dot_dimension_numbers<[1], [0], [0], [1], [0, 0, 1, 1], [], []>} : vector<16x64xbf16>, vector<64x32xbf16>, vector<16x32xf32> -> vector<16x32xf32>
    %c0_24 = arith.constant 0 : index
    %c0_25 = arith.constant 0 : index
    %c0_26 = arith.constant 0 : index
    %31 = vector.load %arg7[%c0_24, %c0_25, %c0_26] : memref<1x1x32xf32, #tpu.memory_space<vmem>>, vector<1x1x32xf32>
    %32 = vector.shape_cast %31 : vector<1x1x32xf32> to vector<1x32xf32>
    %c0_i32_27 = arith.constant 0 : i32
    %33 = arith.cmpi eq, %arg2, %c0_i32_27 : i32
    %34 = arith.extui %33 : i1 to i32
    %35 = arith.sitofp %34 : i32 to f32
    %36 = vector.broadcast %35 : f32 to vector<1x32xf32>
    %37 = arith.mulf %32, %36 : vector<1x32xf32>
    %38 = vector.broadcast %37 : vector<1x32xf32> to vector<16x32xf32>
    %39 = arith.addf %30, %38 : vector<16x32xf32>
    %c0_28 = arith.constant 0 : index
    %c0_29 = arith.constant 0 : index
    %40 = vector.load %arg9[%c0_28, %c0_29] : memref<16x32xf32, #tpu.memory_space<vmem>>, vector<16x32xf32>
    %c0_30 = arith.constant 0 : index
    %c0_31 = arith.constant 0 : index
    %c0_32 = arith.constant 0 : index
    %41 = vector.load %arg8[%c0_30, %c0_31, %c0_32] : memref<1x16x1xf32, #tpu.memory_space<vmem>>, vector<1x16x1xf32>
    %42 = vector.shape_cast %41 : vector<1x16x1xf32> to vector<16x1xf32>
    %43 = vector.broadcast %42 : vector<16x1xf32> to vector<16x32xf32>
    %44 = arith.mulf %39, %43 : vector<16x32xf32>
    %45 = arith.addf %40, %44 : vector<16x32xf32>
    %c0_33 = arith.constant 0 : index
    %c0_34 = arith.constant 0 : index
    %46 = vector.load %arg9[%c0_33, %c0_34] : memref<16x32xf32, #tpu.memory_space<vmem>>, vector<16x32xf32>
    tpu.vector_store %arg9[%c0_33, %c0_34], %45 {strides = array<i32>} : memref<16x32xf32, #tpu.memory_space<vmem>>, vector<16x32xf32>,
    return
  }
  func.func @transform_0(%arg0: i32, %arg1: i32, %arg2: i32) -> (i32, i32) {
    %c0_i32 = arith.constant 0 : i32
    %c0_i32_0 = arith.constant 0 : i32
    return %arg0, %c0_i32 : i32, i32
  }
  func.func @transform_1(%arg0: i32, %arg1: i32, %arg2: i32) -> (i32, i32, i32, i32) {
    %c0_i32 = arith.constant 0 : i32
    %c0_i32_0 = arith.constant 0 : i32
    %c0_i32_1 = arith.constant 0 : i32
    return %arg1, %c0_i32, %c0_i32_0, %arg2 : i32, i32, i32, i32
  }
  func.func @transform_2(%arg0: i32, %arg1: i32, %arg2: i32) -> (i32, i32, i32, i32) {
    %c0_i32 = arith.constant 0 : i32
    %c0_i32_0 = arith.constant 0 : i32
    %c0_i32_1 = arith.constant 0 : i32
    return %arg1, %c0_i32, %c0_i32_0, %arg2 : i32, i32, i32, i32
  }
  func.func @transform_3(%arg0: i32, %arg1: i32, %arg2: i32) -> (i32, i32, i32) {
    %c0_i32 = arith.constant 0 : i32
    %c0_i32_0 = arith.constant 0 : i32
    return %arg1, %arg2, %c0_i32 : i32, i32, i32
  }
  func.func @transform_4(%arg0: i32, %arg1: i32, %arg2: i32) -> (i32, i32, i32) {
    %c0_i32 = arith.constant 0 : i32
    %c0_i32_0 = arith.constant 0 : i32
    %c0_i32_1 = arith.constant 0 : i32
    return %arg1, %c0_i32, %c0_i32_0 : i32, i32, i32
  }
  func.func @transform_5(%arg0: i32, %arg1: i32, %arg2: i32) -> (i32, i32, i32) {
    %c0_i32 = arith.constant 0 : i32
    %c0_i32_0 = arith.constant 0 : i32
    return %arg1, %arg0, %c0_i32 : i32, i32, i32
  }
  func.func @transform_6(%arg0: i32, %arg1: i32, %arg2: i32) -> (i32, i32) {
    %c0_i32 = arith.constant 0 : i32
    %c0_i32_0 = arith.constant 0 : i32
    return %arg0, %c0_i32 : i32, i32
  }
}

</mosaic_0001>

<bundles_post_ra>
// kernel: moe_mlp_forward.1
= control target key start
LH: loop header
LB: loop body
LE: loop exit
PB: predicated region body
PF: predicated region fallthrough
CT: control target
= control target key end

     0   :  { %11 = vsyncpa [#allocation3], 0  ;;  %s989_s21 = smov 0   ;;  %s991_s22 = smov 0   ;;  %s1069_s0 = inlined_call_operand.vmem [shape: bf16[16,32], index: 0, kind: input, shape index: {}]   ;;  %s1070_s1 = inlined_call_operand.vmem [shape: bf16[4,2,32,64], index: 1, kind: input, shape index: {}]   ;;  %s1071_s2 = inlined_call_operand.vmem [shape: f32[4,2,1,64], index: 2, kind: input, shape index: {}]   ;;  %s1072_s3 = inlined_call_operand.vmem [shape: bf16[4,64,32], index: 3, kind: input, shape index: {}]   ;;  %s1073_s4 = inlined_call_operand.vmem [shape: f32[4,1,32], index: 4, kind: input, shape index: {}]   ;;  %s1074_s5 = inlined_call_operand.vmem [shape: f32[4,16,1], index: 5, kind: input, shape index: {}]   ;;  %s1075_s6 = inlined_call_operand.hbm [shape: f32[16,32], index: 6, kind: output, shape index: {}]  }
   0x1   :  { %s993_s23 = smov 0  }
   0x2 LB: > { %s770_s24 = sadd.s32 4294967295, %s947_s23   ;;  %s32_s25 = sadd.s32 1, %s943_s22  ;;  %s947_s23 = sphi %s993_s23, %s17_s23   ;;  %s943_s22 = sphi %s991_s22, %s1077_s22   ;;  %s939_s21 = sphi %s989_s21, %s1076_s21  }
   0x3   : > { %p34_p0 = scmp.ge.s32.totalorder %s32_s25, 4  ;;  %p774_p1 = scmp.ge.s32.totalorder %s947_s23, 1 }
   0x4   : > { %p304_p2 = scmp.lt.s32.totalorder %s947_s23, 5 }
   0x5   : > { %s1079_s25 = smov (%p34_p0, %s32_s25), 0 }
   0x6   : > { %p305_p3 = pnand %p774_p1, %p304_p2 }
   0x7   : > { %p371_p4 = scmp.lt.s32.totalorder (!%p305_p3), %s939_s21, 3  ;;  %p411_p5 = scmp.eq.s32.totalorder (!%p305_p3), %s939_s21, 0 }
   0x8   : > { %308 = sbr.rel (%p305_p3) target bundleno = 350 (0x15e), region = 44 }
   0xd   : > { %s1081_s21 = smov (!%p371_p4, %s939_s21), 3  ;;  %vm417_vm0 = vcmask (%p411_p5), 261120   ;;  %v949_v0 = vmov (%p411_p5), 0.0  }
   0xe   : > { %s833_s26 = sshll.u32 %s1081_s21, 5  ;;  %s777_s27 = sshll.u32 %s1081_s21, 1  ;;  %418 = vst.msk [vmem:[#allocation2] sm:$0xff] (%p411_p5), %vm417_vm0, %v949_v0 }
   0xf   : > { %s378_s30 = scalar_lea.vmem %s1070_s1, %s833_s26  ;;  %s1018_s9 = scalar_lea.vmem %s1071_s2, %s777_s27  ;;  %419 = vst.msk [vmem:[#allocation2 + $0x8] sm:$0xff] (%p411_p5), %vm417_vm0, %v949_v0 }
  0x10   : > { %s1023_s12 = scalar_lea.vmem %s1072_s3, %s833_s26  ;;  %s398_s15 = scalar_lea.vmem %s1073_s4, %s1081_s21 }
  0x11   : > { %s835_s16 = sshll.u32 %s1081_s21, 4  ;;  %416 = sbr.rel (!%p411_p5) target bundleno = 22 (0x16), region = 48 }
  0x12   : > { %s1033_s19 = scalar_lea.vmem %s1074_s5, %s835_s16 }
  0x16 PF: > { %v841_v1 = vld [vmem:[%s378_s30 + $0x18] sm:$0xff]  ;;  %v839_v2 = vld [vmem:[%s378_s30 + $0x8] sm:$0xff]  ;;  %v840_v3 = vld [vmem:[%s378_s30 + $0x10] sm:$0xff]  ;;  %vm452_vm1 = vcmask 261120   ;;  %v950_v20 = vmov 0   ;;  %vm584_vm10 = vcmask 523264  }
  0x17   : > { %493 = vmatpush.bf16.msra.mxu1 %v841_v1  ;;  %462 = vmatpush.bf16.msra.mxu0 %v839_v2  ;;  %v838_v4 = vld [vmem:[%s378_s30] sm:$0xff]  ;;  %v845_v6 = vld [vmem:[%s1023_s12 + $0x18] sm:$0xff]  ;;  %v844_v9 = vld [vmem:[%s1023_s12 + $0x10] sm:$0xff]  ;;  %s951_s29 = smov [#allocation2]   ;;  %p850_p6 = scmp.eq.s32.totalorder %s770_s24, 3 }
  0x18   : > { %v837_v5 = vld [vmem:[%s1069_s0] sm:$0xff]  ;;  %592 = vmatpush.bf16.msra.mxu2 %v845_v6  ;;  %v843_v12 = vld [vmem:[%s1023_s12 + $0x8] sm:$0xff]  ;;  %881 = vset.pattern.permute.xlu0 %v950_v20  ;;  %s630_s30 = sshll.u32 %s951_s29, 4  ;;  %s952_s21 = smov 128   ;;  %s631_s30 = int_to_ptr.vmem [resolvable:$true] %s630_s30 }
  0x19   : > { %v882_v7 = vld [vmem:[%s1018_s9 + $0x1] ss:$0 sm:$0xff]  ;;  %v605_v24 = vld [vmem:[%s1033_s19 + $0x8] sm:$0xff]  ;;  %v883_v40 = vld [vmem:[%s1018_s9] ss:$0 sm:$0xff]  ;;  %s632_s9 = sshll.u32 %s1075_s6, 4  ;;  %s633_s9 = int_to_ptr.hbm [resolvable:$true] %s632_s9 }
  0x1a   : > { %v842_v14 = vld [vmem:[%s1023_s12] sm:$0xff]  ;;  %v603_v0 = vld [vmem:[#allocation2 + $0x8] sm:$0xff]  ;;  %s953_s10 = smov 8  }
  0x1b   : > { %494 = vmatpush.bf16.msra.mxu1 %v840_v3  ;;  %463 = vmatpush.bf16.msra.mxu0 %v838_v4  ;;  %v604_v19 = vld [vmem:[%s1033_s19] sm:$0xff] }
  0x1c   : > { %593 = vmatpush.bf16.msra.mxu2 %v844_v9  ;;  %608 = vperm.xlu0 %881, %v604_v19   ;;  %v884_v54 = vld [vmem:[%s398_s15] ss:$0 sm:$0xff] }
  0x1d   : > { %v602_v58 = vld [vmem:[#allocation2] sm:$0xff] }
  0x1e   : > { %809 = vmatmul.msk.bf16.vlgmr.msra.gmra.mxu1 %vm452_vm1, %v837_v5  ;;  %799 = vmatmul.msk.bf16.vlgmr.msra.gmra.mxu0 %vm452_vm1, %v837_v5 }
  0x20   : > { %594 = vmatpush.bf16.msra.mxu2 %v843_v12 }
  0x24   : > { %595 = vmatpush.bf16.msra.mxu2 %v842_v14  ;;  %613 = vperm.xlu0 %881, %v605_v24  }
  0x8e   : > { %v609_v55 = vpop.permute.xlu0 %608 }
  0x96   : > { %v614_v63 = vpop.permute.xlu0 %613 }
  0x9b   : > { %v496_v8 = vpop.f32.mrf.mxu1  ;;  %v465_v28 = vpop.f32.mrf.mxu0 }
  0x9c   : > { %v497_v10 = vadd.f32 %v882_v7, %v496_v8  ;;  %v466_v47 = vadd.f32 %v883_v40, %v465_v28 }
  0x9e   : > { %v810_v11 = vmul.f32 -1.442695, %v497_v10 }
  0xa0   : > { %885 = vpow2.f32 %v810_v11 }
  0xa3   : > { %v498_v13 = vpop.f32.mrf.mxu1  ;;  %v467_v44 = vpop.f32.mrf.mxu0 }
  0xa4   : > { %v499_v15 = vadd.f32 %v882_v7, %v498_v13  ;;  %v468_v50 = vadd.f32 %v883_v40, %v467_v44 }
  0xa6   : > { %v886_v16 = vpop.eup %885  ;;  %v811_v17 = vmul.f32 -1.442695, %v499_v15 }
  0xa7   : > { %v507_v18 = vadd.f32 1.0, %v886_v16 }
  0xa8   : > { %887 = vpow2.f32 %v811_v17 }
  0xa9   : > { %889 = vrcp.f32 %v507_v18  ;;  %v520_v31 = vand.u32 2147483648, %v507_v18  ;;  %vm514_vm3 = vweird.f32 %v507_v18  ;;  %v518_v32 = vand.u32 2147483647, %v507_v18 }
  0xab   : > { %v521_v36 = vor.u32 1.1754944e-38, %v520_v31  ;;  %vm519_vm5 = vcmp.eq.f32.partialorder %v518_v32, 8.507059e+37 }
  0xae   : > { %v888_v21 = vpop.eup %887 }
  0xaf   : > { %v890_v22 = vpop.eup %889  ;;  %v508_v23 = vadd.f32 1.0, %v888_v21 }
  0xb0   : > { %v510_v25 = vmul.f32 %v890_v22, %v507_v18  ;;  %vm515_vm2 = vweird.f32 %v890_v22 }
  0xb1   : > { %891 = vrcp.f32 %v508_v23  ;;  %vm516_vm4 = vmor %vm514_vm3, %vm515_vm2  ;;  %v535_v37 = vand.u32 2147483648, %v508_v23  ;;  %v533_v39 = vand.u32 2147483647, %v508_v23  ;;  %vm529_vm7 = vweird.f32 %v508_v23 }
  0xb2   : > { %v511_v26 = vsub.f32 1.0, %v510_v25 }
  0xb3   : > { %v536_v43 = vor.u32 1.1754944e-38, %v535_v37  ;;  %vm534_vm9 = vcmp.eq.f32.partialorder %v533_v39, 8.507059e+37 }
  0xb4   : > { %v512_v27 = vmul.f32 %v890_v22, %v511_v26 }
  0xb6   : > { %v513_v29 = vadd.f32 %v890_v22, %v512_v27 }
  0xb7   : > { %v892_v30 = vpop.eup %891 }
  0xb8   : > { %v525_v33 = vmul.f32 %v892_v30, %v508_v23  ;;  %v517_v34 = vsel %vm516_vm4, %v890_v22, %v513_v29  ;;  %vm530_vm6 = vweird.f32 %v892_v30 }
  0xb9   : > { %v522_v41 = vsel %vm519_vm5, %v521_v36, %v517_v34  ;;  %vm531_vm8 = vmor %vm529_vm7, %vm530_vm6 }
  0xba   : > { %v526_v35 = vsub.f32 1.0, %v525_v33  ;;  %v539_v45 = vmul.f32 %v522_v41, %v497_v10 }
  0xbc   : > { %v527_v38 = vmul.f32 %v892_v30, %v526_v35  ;;  %v541_v51 = vmul.f32 %v539_v45, %v466_v47 }
  0xbe   : > { %v528_v42 = vadd.f32 %v892_v30, %v527_v38 }
  0xc0   : > { %v532_v46 = vsel %vm531_vm8, %v892_v30, %v528_v42 }
  0xc1   : > { %v537_v48 = vsel %vm534_vm9, %v536_v43, %v532_v46 }
  0xc2   : > { %v540_v49 = vmul.f32 %v537_v48, %v499_v15 }
  0xc4   : > { %v542_v52 = vmul.f32 %v540_v49, %v468_v50 }
  0xc6   : > { %v543_v53 = vpack.c.bf16 %v542_v52, %v541_v51 }
  0xc8   : > { %828 = vmatmul.msk.bf16.vlgmr.msra.gmra.mxu2 %vm584_vm10, %v543_v53 }
 0x14b   : > { %v597_v56 = vpop.f32.mrf.mxu2 }
 0x14c   : > { %v598_v57 = vadd.f32 %v884_v54, %v597_v56 }
 0x14e   : > { %v616_v59 = vmul.f32 %v609_v55, %v598_v57 }
 0x150   : > { %v618_v60 = vadd.f32 %v616_v59, %v602_v58 }
 0x152   : > { %620 = vst.msk [vmem:[#allocation2] sm:$0xff] %vm452_vm1, %v618_v60 }
 0x153   : > { %v599_v61 = vpop.f32.mrf.mxu2 }
 0x154   : > { %v600_v62 = vadd.f32 %v884_v54, %v599_v61 }
 0x156   : > { %v617_v1 = vmul.f32 %v614_v63, %v600_v62 }
 0x158   : > { %v619_v2 = vadd.f32 %v617_v1, %v603_v0 }
 0x15a   : > { %621 = vst.msk [vmem:[#allocation2 + $0x8] sm:$0xff] %vm452_vm1, %v619_v2 }
 0x15b   : > { %847 = dma.vmem_to_hbm [thread:$0]  (%p850_p6), %s631_s30, 256, %s633_s9, [#allocation3], %s952_s21, %s952_s21, %s953_s10  }
 0x15c   : > { %934 = dma.done.wait (%p850_p6), [#allocation3], 256  }
 0x15d   : > { %936 = vsyncadd (%p850_p6), [#allocation3], 4294967040 }
 0x15e PF: > { %s17_s23 = sadd.s32 1, %s947_s23   ;;  %s1076_s21 = smov %s943_s22 }
 0x15f   : > { %p14_p7 = scmp.ge.s32.totalorder %s17_s23, 6   ;;  %s1077_s22 = smov %s1079_s25 }
 0x161   :  { %16 = sbr.rel (!%p14_p7) target bundleno = 2 (0x2), region = 93 }
 0x166   :  { %649 = vsyncpa [#allocation3], 1 }
 0x167   :  { %651 = vsyncpa [#allocation3 + $0x1], 1 }

</bundles_post_ra>
